<compile_context>
chip_gen: v7x
topology: tpu7x:2x2x1
jax: 0.10.0
libtpu: 0.0.40
codegen_flags: <defaults>
</compile_context>

<pallas_src>
import jax
import jax.numpy as jnp
import numpy as np
from jax.experimental import pallas as pl
from jax.experimental.pallas import tpu as pltpu

EXPANSION = 4
KSIZE = 7
PAD = 3
LANE = 128          # TPU lane width
HALO = 8            # per-sample halo rows (>= PAD, sublane-aligned)

VMEM_BUDGET = 40 * 1024 * 1024      # conservative tile budget (v7x has 64 MiB/TC)
VMEM_LIMIT_CAP = 48 * 1024 * 1024   # never request more than this


def _bottleneck_kernel(x_ref, w1_ref, w2_ref, w3_ref, b1_ref, b2_ref, b3_ref,
                       o_ref, h1s_ref):
    """One batch-tile per grid step.

    x_ref : (TB, L, Cin)              input block (bf16)
    w1_ref: (Cin, Pp)                 conv1 weight, BN1 scale folded   (bf16)
    w2_ref: (KSIZE, Pp, Pp)           conv2 per-tap weights, BN2 folded (bf16)
    w3_ref: (Pp, Cin)                 conv3 weight, BN3 scale folded   (bf16)
    b*_ref: (1, Pp)/(1, Cin)          folded BatchNorm biases          (f32)
    o_ref : (TB, L, Cin)              output block (bf16)
    h1s_ref: (TB, L + 2*HALO, Pp)     bf16 scratch: h1 with per-sample zero halo
    """
    TB, L, Cin = x_ref.shape
    Pp = w1_ref.shape[1]
    M = TB * L

    # --- conv1 (1x1, BN1 scale folded) + bias + ReLU ----------------------
    xb = x_ref[...].reshape(M, Cin)                       # bf16, no cast needed
    h1 = jnp.dot(xb, w1_ref[...], preferred_element_type=jnp.float32)
    h1 = jnp.maximum(h1 + b1_ref[...], 0.0)               # (M, Pp) f32

    # --- conv2 (k=7, pad=3): per-sample zero halo + 7 shift-accum matmuls --
    # Zero the halo rows EVERY step (cheap) so the kernel is correct under
    # megacore parallel sharding; then store h1 once, as bf16.
    zhalo = jnp.zeros((TB, HALO, Pp), h1s_ref.dtype)
    h1s_ref[:, pl.ds(0, HALO), :] = zhalo
    h1s_ref[:, pl.ds(HALO + L, HALO), :] = zhalo
    h1s_ref[:, pl.ds(HALO, L), :] = h1.reshape(TB, L, Pp).astype(h1s_ref.dtype)

    acc = jnp.zeros((M, Pp), jnp.float32)
    for k in range(KSIZE):                                # static, unrolled
        d = k - PAD
        tap = h1s_ref[:, pl.ds(HALO + d, L), :].reshape(M, Pp)      # bf16
        acc = acc + jnp.dot(tap, w2_ref[k], preferred_element_type=jnp.float32)
    h2 = jnp.maximum(acc + b2_ref[...], 0.0)              # (M, Pp) f32

    # --- dropout: identity in eval mode -----------------------------------

    # --- conv3 (1x1 expansion, BN3 folded) + bias + residual + ReLU -------
    h3 = jnp.dot(h2.astype(jnp.bfloat16), w3_ref[...],
                 preferred_element_type=jnp.float32)
    # Re-read the (VMEM-resident) input block here instead of keeping it live
    # across all three matmuls.
    xres = x_ref[...].reshape(M, Cin).astype(jnp.float32)
    out = jnp.maximum(h3 + b3_ref[...] + xres, 0.0)
    o_ref[...] = out.reshape(TB, L, Cin).astype(o_ref.dtype)


def _pick_batch_tile(N, L, target_rows=2048, min_steps=2, max_rows=None):
    """Batch tile: ~target_rows MXU rows per step, capped by a VMEM row budget,
    and shrunk so the grid has >= min_steps steps (keeps both v7x TCs busy)."""
    tb = max(1, target_rows // max(L, 1))
    if max_rows is not None:
        tb = min(tb, max(1, max_rows // max(L, 1)))
    if N >= min_steps:
        tb = min(tb, N // min_steps)
    tb = max(1, min(tb, N))
    while N % tb:
        tb -= 1
    return tb


def bottleneck_pallas(x_nlc, prep, *, batch_tile=None):
    """x_nlc: (N, L, Cin) channels-last input; prep: prepared parameters.

    I/O is bf16 (HBM-bound on v6e/v7x); accumulation and bias/residual math
    are f32 inside the kernel."""
    w1, w2, w3, b1, b2, b3 = prep
    N, L, Cin = x_nlc.shape
    Pp = w1.shape[1]
    if x_nlc.dtype != jnp.bfloat16:
        x_nlc = x_nlc.astype(jnp.bfloat16)

    # Rough per-row VMEM cost: double-buffered bf16 x/out blocks + bf16 h1
    # scratch + f32 compute temps headroom.  Fixed cost: (double-buffered)
    # weights/biases + 1 MiB margin for compiler temps.
    per_row = (2 * 2 * Cin * 2) + Pp * 2 + 6 * max(Pp, Cin) * 4
    fixed = ((Cin * Pp + KSIZE * Pp * Pp + Pp * Cin) * 2 * 2
             + (2 * Pp + Cin) * 4 * 2 + (1 << 20))
    max_rows = max(L, (VMEM_BUDGET - fixed) // per_row)

    TB = batch_tile or _pick_batch_tile(N, L, max_rows=max_rows)
    assert N % TB == 0

    est = fixed + TB * L * per_row + 2 * TB * 2 * HALO * Pp * 2
    vmem_limit = int(min(VMEM_LIMIT_CAP, max(16 * 1024 * 1024, est)))

    full = lambda a: pl.BlockSpec(a.shape, lambda n: (0,) * a.ndim)

    # NOTE: grid-invariant weight/bias inputs could be single-buffered via
    # pipeline_mode=pl.Buffered(1) to reclaim ~0.5 MiB on v7x; kept default
    # double-buffering here for maximum compatibility.
    return pl.pallas_call(
        _bottleneck_kernel,
        out_shape=jax.ShapeDtypeStruct((N, L, Cin), jnp.bfloat16),
        grid_spec=pltpu.PrefetchScalarGridSpec(
            num_scalar_prefetch=0,
            grid=(N // TB,),
            in_specs=[
                pl.BlockSpec((TB, L, Cin), lambda n: (n, 0, 0)),   # x
                full(w1), full(w2), full(w3),
                full(b1), full(b2), full(b3),
            ],
            out_specs=pl.BlockSpec((TB, L, Cin), lambda n: (n, 0, 0)),
            scratch_shapes=[
                pltpu.VMEM((TB, L + 2 * HALO, Pp), jnp.bfloat16),  # h1 + halo
            ],
        ),
        compiler_params=pltpu.CompilerParams(
            dimension_semantics=("parallel",),
            vmem_limit_bytes=vmem_limit,
        ),
    )(x_nlc, w1, w2, w3, b1, b2, b3)


def make_params(key, inplanes, planes):
    """Raw PyTorch-layout parameters (Conv1d weights + BN eval-mode stats)."""
    out3 = planes * EXPANSION
    ks = jax.random.split(key, 15)
    w1_t = 0.1 * jax.random.normal(ks[0], (planes, inplanes, 1), jnp.float32)
    w2_t = 0.1 * jax.random.normal(ks[1], (planes, planes, KSIZE), jnp.float32)
    w3_t = 0.1 * jax.random.normal(ks[2], (out3, planes, 1), jnp.float32)
    uni = lambda k, c: 0.5 + jax.random.uniform(k, (c,), jnp.float32)   # [0.5,1.5)
    nrm = lambda k, c: 0.1 * jax.random.normal(k, (c,), jnp.float32)
    g1, be1, m1, v1 = uni(ks[3], planes), nrm(ks[4], planes), nrm(ks[5], planes), uni(ks[6], planes)
    g2, be2, m2, v2 = uni(ks[7], planes), nrm(ks[8], planes), nrm(ks[9], planes), uni(ks[10], planes)
    g3, be3, m3, v3 = uni(ks[11], out3), nrm(ks[12], out3), nrm(ks[13], out3), uni(ks[14], out3)
    return (w1_t, w2_t, w3_t, g1, be1, m1, v1, g2, be2, m2, v2, g3, be3, m3, v3)


def prepare_params(raw, eps=1e-5):
    """Fold BN scales into weights, re-layout for NLC matmuls, pad the planes
    dim to a multiple of 128 lanes, and pre-cast matmul weights to bf16."""
    (w1_t, w2_t, w3_t, g1, be1, m1, v1, g2, be2, m2, v2, g3, be3, m3, v3) = raw
    P = w1_t.shape[0]
    Pp = ((P + LANE - 1) // LANE) * LANE

    def fold(g, b, m, v):
        s = g / jnp.sqrt(v + eps)
        return s, b - m * s

    s1, b1 = fold(g1, be1, m1, v1)
    s2, b2 = fold(g2, be2, m2, v2)
    s3, b3 = fold(g3, be3, m3, v3)

    # conv1: (P, Cin, 1) -> (Cin, Pp), BN1 scale folded into output columns.
    w1 = (w1_t[:, :, 0] * s1[:, None]).T
    w1 = jnp.pad(w1, ((0, 0), (0, Pp - P)))
    # conv2: (P, P, K) -> (K, Pp, Pp) per-tap weights, BN2 scale folded.
    w2 = jnp.transpose(w2_t * s2[:, None, None], (2, 1, 0))   # (K, Cin=P, Cout=P)
    w2 = jnp.pad(w2, ((0, 0), (0, Pp - P), (0, Pp - P)))
    # conv3: (C3, P, 1) -> (Pp, C3), BN3 scale folded.
    w3 = (w3_t[:, :, 0] * s3[:, None]).T
    w3 = jnp.pad(w3, ((0, Pp - P), (0, 0)))

    b1p = jnp.pad(b1, (0, Pp - P))[None, :].astype(jnp.float32)
    b2p = jnp.pad(b2, (0, Pp - P))[None, :].astype(jnp.float32)
    b3p = b3[None, :].astype(jnp.float32)

    return (w1.astype(jnp.bfloat16), w2.astype(jnp.bfloat16),
            w3.astype(jnp.bfloat16), b1p, b2p, b3p)


def reference_forward(x_nlc, prep):
    """Pure-JAX reference (same folded/bf16 params, bf16 I/O, NLC layout)."""
    w1, w2, w3, b1, b2, b3 = prep
    N, L, Cin = x_nlc.shape
    xb = x_nlc.astype(jnp.bfloat16)
    x32 = xb.astype(jnp.float32)
    h1 = jnp.einsum('nlc,cp->nlp', xb, w1, preferred_element_type=jnp.float32)
    h1 = jnp.maximum(h1 + b1, 0.0)
    h1p = jnp.pad(h1.astype(jnp.bfloat16), ((0, 0), (PAD, PAD), (0, 0)))
    h2 = sum(jnp.einsum('nlp,pq->nlq', h1p[:, k:k + L, :], w2[k],
                        preferred_element_type=jnp.float32)
             for k in range(KSIZE))
    h2 = jnp.maximum(h2 + b2, 0.0)
    h3 = jnp.einsum('nlp,pq->nlq', h2.astype(jnp.bfloat16), w3,
                    preferred_element_type=jnp.float32)
    out = jnp.maximum(h3 + b3 + x32, 0.0)
    return out.astype(jnp.bfloat16)


if __name__ == "__main__":
    # stride=1, downsample=None  =>  inplanes == planes * 4.
    # planes=32 -> inplanes=128: lane-dense residual/output channel dim.
    N, planes, L = 2, 32, 16
    inplanes = planes * EXPANSION                              # 128

    key = jax.random.PRNGKey(0)
    kx, kp = jax.random.split(key)
    x_ncl = jax.random.normal(kx, (N, inplanes, L), jnp.float32)  # PyTorch NCL
    raw = make_params(kp, inplanes, planes)
    prep = prepare_params(raw)

    # Single NCL -> NLC transpose at the model boundary (an NLC pipeline
    # would skip this entirely); kernel consumes and produces NLC bf16.
    x_nlc = jnp.transpose(x_ncl, (0, 2, 1)).astype(jnp.bfloat16)  # (N, L, Cin)

    out = jax.block_until_ready(bottleneck_pallas(x_nlc, prep))
    ref = jax.block_until_ready(reference_forward(x_nlc, prep))

    np.testing.assert_allclose(np.asarray(out.astype(jnp.float32)),
                               np.asarray(ref.astype(jnp.float32)),
                               rtol=2e-2, atol=2e-2)
    assert out.shape == (N, L, inplanes)
    assert out.dtype == jnp.bfloat16
    print("KERNEL_OK")
</pallas_src>

<mosaic_0001>
module attributes {stable_mosaic.version = 11 : i64} {
  func.func @_bottleneck_kernel(%arg0: i32, %arg1: memref<1x16x128xbf16, #tpu.memory_space<vmem>>, %arg2: memref<128x128xbf16, #tpu.memory_space<vmem>>, %arg3: memref<7x128x128xbf16, #tpu.memory_space<vmem>>, %arg4: memref<128x128xbf16, #tpu.memory_space<vmem>>, %arg5: memref<1x128xf32, #tpu.memory_space<vmem>>, %arg6: memref<1x128xf32, #tpu.memory_space<vmem>>, %arg7: memref<1x128xf32, #tpu.memory_space<vmem>>, %arg8: memref<1x16x128xbf16, #tpu.memory_space<vmem>>, %arg9: memref<1x32x128xbf16, #tpu.memory_space<vmem>>) attributes {dimension_semantics = [#tpu.dimension_semantics<parallel>], iteration_bounds = array<i64: 2>, scalar_prefetch = 0 : i64, scratch_operands = 1 : i64, tpu.core_type = #tpu.core_type<tc>, window_params = [{transform_indices = @transform_0, window_bounds = array<i64: 1, 16, 128>}, {pipeline_mode = #tpu.pipeline_mode<synchronous>, transform_indices = @transform_1, window_bounds = array<i64: 128, 128>}, {pipeline_mode = #tpu.pipeline_mode<synchronous>, transform_indices = @transform_2, window_bounds = array<i64: 7, 128, 128>}, {pipeline_mode = #tpu.pipeline_mode<synchronous>, transform_indices = @transform_3, window_bounds = array<i64: 128, 128>}, {pipeline_mode = #tpu.pipeline_mode<synchronous>, transform_indices = @transform_4, window_bounds = array<i64: 1, 128>}, {pipeline_mode = #tpu.pipeline_mode<synchronous>, transform_indices = @transform_5, window_bounds = array<i64: 1, 128>}, {pipeline_mode = #tpu.pipeline_mode<synchronous>, transform_indices = @transform_6, window_bounds = array<i64: 1, 128>}, {transform_indices = @transform_7, window_bounds = array<i64: 1, 16, 128>}]} {
    %c0 = arith.constant 0 : index
    %c0_0 = arith.constant 0 : index
    %c0_1 = arith.constant 0 : index
    %0 = vector.load %arg1[%c0, %c0_0, %c0_1] : memref<1x16x128xbf16, #tpu.memory_space<vmem>>, vector<1x16x128xbf16>
    %1 = vector.shape_cast %0 : vector<1x16x128xbf16> to vector<16x128xbf16>
    %c0_2 = arith.constant 0 : index
    %c0_3 = arith.constant 0 : index
    %2 = vector.load %arg2[%c0_2, %c0_3] : memref<128x128xbf16, #tpu.memory_space<vmem>>, vector<128x128xbf16>
    %cst = arith.constant dense<0.000000e+00> : vector<16x128xf32>
    %3 = tpu.matmul %1, %2, %cst {dimension_numbers = #tpu.dot_dimension_numbers<[1], [0], [0], [1], [0, 0, 1, 1], [], []>} : vector<16x128xbf16>, vector<128x128xbf16>, vector<16x128xf32> -> vector<16x128xf32>
    %c0_4 = arith.constant 0 : index
    %c0_5 = arith.constant 0 : index
    %4 = vector.load %arg5[%c0_4, %c0_5] : memref<1x128xf32, #tpu.memory_space<vmem>>, vector<1x128xf32>
    %5 = vector.broadcast %4 : vector<1x128xf32> to vector<16x128xf32>
    %6 = arith.addf %3, %5 : vector<16x128xf32>
    %cst_6 = arith.constant 0.000000e+00 : f32
    %7 = vector.broadcast %cst_6 : f32 to vector<16x128xf32>
    %8 = arith.maximumf %6, %7 : vector<16x128xf32>
    %cst_7 = arith.constant 0.000000e+00 : bf16
    %9 = vector.broadcast %cst_7 : bf16 to vector<1x8x128xbf16>
    %c0_8 = arith.constant 0 : index
    %c0_9 = arith.constant 0 : index
    %c0_10 = arith.constant 0 : index
    %10 = vector.load %arg9[%c0_8, %c0_9, %c0_10] : memref<1x32x128xbf16, #tpu.memory_space<vmem>>, vector<1x8x128xbf16>
    tpu.vector_store %arg9[%c0_8, %c0_9, %c0_10], %9 {strides = array<i32>} : memref<1x32x128xbf16, #tpu.memory_space<vmem>>, vector<1x8x128xbf16>,
    %c0_11 = arith.constant 0 : index
    %c24 = arith.constant 24 : index
    %c0_12 = arith.constant 0 : index
    %11 = vector.load %arg9[%c0_11, %c24, %c0_12] : memref<1x32x128xbf16, #tpu.memory_space<vmem>>, vector<1x8x128xbf16>
    tpu.vector_store %arg9[%c0_11, %c24, %c0_12], %9 {strides = array<i32>} : memref<1x32x128xbf16, #tpu.memory_space<vmem>>, vector<1x8x128xbf16>,
    %12 = vector.shape_cast %8 : vector<16x128xf32> to vector<1x16x128xf32>
    %13 = arith.truncf %12 : vector<1x16x128xf32> to vector<1x16x128xbf16>
    %c0_13 = arith.constant 0 : index
    %c8 = arith.constant 8 : index
    %c0_14 = arith.constant 0 : index
    %14 = vector.load %arg9[%c0_13, %c8, %c0_14] : memref<1x32x128xbf16, #tpu.memory_space<vmem>>, vector<1x16x128xbf16>
    tpu.vector_store %arg9[%c0_13, %c8, %c0_14], %13 {strides = array<i32>} : memref<1x32x128xbf16, #tpu.memory_space<vmem>>, vector<1x16x128xbf16>,
    %cst_15 = arith.constant 0.000000e+00 : f32
    %15 = vector.broadcast %cst_15 : f32 to vector<16x128xf32>
    %c0_16 = arith.constant 0 : index
    %c5 = arith.constant 5 : index
    %c0_17 = arith.constant 0 : index
    %16 = vector.load %arg9[%c0_16, %c5, %c0_17] : memref<1x32x128xbf16, #tpu.memory_space<vmem>>, vector<1x16x128xbf16>
    %17 = vector.shape_cast %16 : vector<1x16x128xbf16> to vector<16x128xbf16>
    %c0_18 = arith.constant 0 : index
    %c0_19 = arith.constant 0 : index
    %c0_20 = arith.constant 0 : index
    %18 = vector.load %arg3[%c0_18, %c0_19, %c0_20] : memref<7x128x128xbf16, #tpu.memory_space<vmem>>, vector<1x128x128xbf16>
    %19 = vector.shape_cast %18 : vector<1x128x128xbf16> to vector<128x128xbf16>
    %cst_21 = arith.constant dense<0.000000e+00> : vector<16x128xf32>
    %20 = tpu.matmul %17, %19, %cst_21 {dimension_numbers = #tpu.dot_dimension_numbers<[1], [0], [0], [1], [0, 0, 1, 1], [], []>} : vector<16x128xbf16>, vector<128x128xbf16>, vector<16x128xf32> -> vector<16x128xf32>
    %21 = arith.addf %15, %20 : vector<16x128xf32>
    %c0_22 = arith.constant 0 : index
    %c6 = arith.constant 6 : index
    %c0_23 = arith.constant 0 : index
    %22 = vector.load %arg9[%c0_22, %c6, %c0_23] : memref<1x32x128xbf16, #tpu.memory_space<vmem>>, vector<1x16x128xbf16>
    %23 = vector.shape_cast %22 : vector<1x16x128xbf16> to vector<16x128xbf16>
    %c1 = arith.constant 1 : index
    %c0_24 = arith.constant 0 : index
    %c0_25 = arith.constant 0 : index
    %24 = vector.load %arg3[%c1, %c0_24, %c0_25] : memref<7x128x128xbf16, #tpu.memory_space<vmem>>, vector<1x128x128xbf16>
    %25 = vector.shape_cast %24 : vector<1x128x128xbf16> to vector<128x128xbf16>
    %cst_26 = arith.constant dense<0.000000e+00> : vector<16x128xf32>
    %26 = tpu.matmul %23, %25, %cst_26 {dimension_numbers = #tpu.dot_dimension_numbers<[1], [0], [0], [1], [0, 0, 1, 1], [], []>} : vector<16x128xbf16>, vector<128x128xbf16>, vector<16x128xf32> -> vector<16x128xf32>
    %27 = arith.addf %21, %26 : vector<16x128xf32>
    %c0_27 = arith.constant 0 : index
    %c7 = arith.constant 7 : index
    %c0_28 = arith.constant 0 : index
    %28 = vector.load %arg9[%c0_27, %c7, %c0_28] : memref<1x32x128xbf16, #tpu.memory_space<vmem>>, vector<1x16x128xbf16>
    %29 = vector.shape_cast %28 : vector<1x16x128xbf16> to vector<16x128xbf16>
    %c2 = arith.constant 2 : index
    %c0_29 = arith.constant 0 : index
    %c0_30 = arith.constant 0 : index
    %30 = vector.load %arg3[%c2, %c0_29, %c0_30] : memref<7x128x128xbf16, #tpu.memory_space<vmem>>, vector<1x128x128xbf16>
    %31 = vector.shape_cast %30 : vector<1x128x128xbf16> to vector<128x128xbf16>
    %cst_31 = arith.constant dense<0.000000e+00> : vector<16x128xf32>
    %32 = tpu.matmul %29, %31, %cst_31 {dimension_numbers = #tpu.dot_dimension_numbers<[1], [0], [0], [1], [0, 0, 1, 1], [], []>} : vector<16x128xbf16>, vector<128x128xbf16>, vector<16x128xf32> -> vector<16x128xf32>
    %33 = arith.addf %27, %32 : vector<16x128xf32>
    %c0_32 = arith.constant 0 : index
    %c8_33 = arith.constant 8 : index
    %c0_34 = arith.constant 0 : index
    %34 = vector.load %arg9[%c0_32, %c8_33, %c0_34] : memref<1x32x128xbf16, #tpu.memory_space<vmem>>, vector<1x16x128xbf16>
    %35 = vector.shape_cast %34 : vector<1x16x128xbf16> to vector<16x128xbf16>
    %c3 = arith.constant 3 : index
    %c0_35 = arith.constant 0 : index
    %c0_36 = arith.constant 0 : index
    %36 = vector.load %arg3[%c3, %c0_35, %c0_36] : memref<7x128x128xbf16, #tpu.memory_space<vmem>>, vector<1x128x128xbf16>
    %37 = vector.shape_cast %36 : vector<1x128x128xbf16> to vector<128x128xbf16>
    %cst_37 = arith.constant dense<0.000000e+00> : vector<16x128xf32>
    %38 = tpu.matmul %35, %37, %cst_37 {dimension_numbers = #tpu.dot_dimension_numbers<[1], [0], [0], [1], [0, 0, 1, 1], [], []>} : vector<16x128xbf16>, vector<128x128xbf16>, vector<16x128xf32> -> vector<16x128xf32>
    %39 = arith.addf %33, %38 : vector<16x128xf32>
    %c0_38 = arith.constant 0 : index
    %c9 = arith.constant 9 : index
    %c0_39 = arith.constant 0 : index
    %40 = vector.load %arg9[%c0_38, %c9, %c0_39] : memref<1x32x128xbf16, #tpu.memory_space<vmem>>, vector<1x16x128xbf16>
    %41 = vector.shape_cast %40 : vector<1x16x128xbf16> to vector<16x128xbf16>
    %c4 = arith.constant 4 : index
    %c0_40 = arith.constant 0 : index
    %c0_41 = arith.constant 0 : index
    %42 = vector.load %arg3[%c4, %c0_40, %c0_41] : memref<7x128x128xbf16, #tpu.memory_space<vmem>>, vector<1x128x128xbf16>
    %43 = vector.shape_cast %42 : vector<1x128x128xbf16> to vector<128x128xbf16>
    %cst_42 = arith.constant dense<0.000000e+00> : vector<16x128xf32>
    %44 = tpu.matmul %41, %43, %cst_42 {dimension_numbers = #tpu.dot_dimension_numbers<[1], [0], [0], [1], [0, 0, 1, 1], [], []>} : vector<16x128xbf16>, vector<128x128xbf16>, vector<16x128xf32> -> vector<16x128xf32>
    %45 = arith.addf %39, %44 : vector<16x128xf32>
    %c0_43 = arith.constant 0 : index
    %c10 = arith.constant 10 : index
    %c0_44 = arith.constant 0 : index
    %46 = vector.load %arg9[%c0_43, %c10, %c0_44] : memref<1x32x128xbf16, #tpu.memory_space<vmem>>, vector<1x16x128xbf16>
    %47 = vector.shape_cast %46 : vector<1x16x128xbf16> to vector<16x128xbf16>
    %c5_45 = arith.constant 5 : index
    %c0_46 = arith.constant 0 : index
    %c0_47 = arith.constant 0 : index
    %48 = vector.load %arg3[%c5_45, %c0_46, %c0_47] : memref<7x128x128xbf16, #tpu.memory_space<vmem>>, vector<1x128x128xbf16>
    %49 = vector.shape_cast %48 : vector<1x128x128xbf16> to vector<128x128xbf16>
    %cst_48 = arith.constant dense<0.000000e+00> : vector<16x128xf32>
    %50 = tpu.matmul %47, %49, %cst_48 {dimension_numbers = #tpu.dot_dimension_numbers<[1], [0], [0], [1], [0, 0, 1, 1], [], []>} : vector<16x128xbf16>, vector<128x128xbf16>, vector<16x128xf32> -> vector<16x128xf32>
    %51 = arith.addf %45, %50 : vector<16x128xf32>
    %c0_49 = arith.constant 0 : index
    %c11 = arith.constant 11 : index
    %c0_50 = arith.constant 0 : index
    %52 = vector.load %arg9[%c0_49, %c11, %c0_50] : memref<1x32x128xbf16, #tpu.memory_space<vmem>>, vector<1x16x128xbf16>
    %53 = vector.shape_cast %52 : vector<1x16x128xbf16> to vector<16x128xbf16>
    %c6_51 = arith.constant 6 : index
    %c0_52 = arith.constant 0 : index
    %c0_53 = arith.constant 0 : index
    %54 = vector.load %arg3[%c6_51, %c0_52, %c0_53] : memref<7x128x128xbf16, #tpu.memory_space<vmem>>, vector<1x128x128xbf16>
    %55 = vector.shape_cast %54 : vector<1x128x128xbf16> to vector<128x128xbf16>
    %cst_54 = arith.constant dense<0.000000e+00> : vector<16x128xf32>
    %56 = tpu.matmul %53, %55, %cst_54 {dimension_numbers = #tpu.dot_dimension_numbers<[1], [0], [0], [1], [0, 0, 1, 1], [], []>} : vector<16x128xbf16>, vector<128x128xbf16>, vector<16x128xf32> -> vector<16x128xf32>
    %57 = arith.addf %51, %56 : vector<16x128xf32>
    %c0_55 = arith.constant 0 : index
    %c0_56 = arith.constant 0 : index
    %58 = vector.load %arg6[%c0_55, %c0_56] : memref<1x128xf32, #tpu.memory_space<vmem>>, vector<1x128xf32>
    %59 = vector.broadcast %58 : vector<1x128xf32> to vector<16x128xf32>
    %60 = arith.addf %57, %59 : vector<16x128xf32>
    %cst_57 = arith.constant 0.000000e+00 : f32
    %61 = vector.broadcast %cst_57 : f32 to vector<16x128xf32>
    %62 = arith.maximumf %60, %61 : vector<16x128xf32>
    %63 = arith.truncf %62 : vector<16x128xf32> to vector<16x128xbf16>
    %c0_58 = arith.constant 0 : index
    %c0_59 = arith.constant 0 : index
    %64 = vector.load %arg4[%c0_58, %c0_59] : memref<128x128xbf16, #tpu.memory_space<vmem>>, vector<128x128xbf16>
    %cst_60 = arith.constant dense<0.000000e+00> : vector<16x128xf32>
    %65 = tpu.matmul %63, %64, %cst_60 {dimension_numbers = #tpu.dot_dimension_numbers<[1], [0], [0], [1], [0, 0, 1, 1], [], []>} : vector<16x128xbf16>, vector<128x128xbf16>, vector<16x128xf32> -> vector<16x128xf32>
    %c0_61 = arith.constant 0 : index
    %c0_62 = arith.constant 0 : index
    %c0_63 = arith.constant 0 : index
    %66 = vector.load %arg1[%c0_61, %c0_62, %c0_63] : memref<1x16x128xbf16, #tpu.memory_space<vmem>>, vector<1x16x128xbf16>
    %67 = vector.shape_cast %66 : vector<1x16x128xbf16> to vector<16x128xbf16>
    %68 = arith.extf %67 : vector<16x128xbf16> to vector<16x128xf32>
    %c0_64 = arith.constant 0 : index
    %c0_65 = arith.constant 0 : index
    %69 = vector.load %arg7[%c0_64, %c0_65] : memref<1x128xf32, #tpu.memory_space<vmem>>, vector<1x128xf32>
    %70 = vector.broadcast %69 : vector<1x128xf32> to vector<16x128xf32>
    %71 = arith.addf %65, %70 : vector<16x128xf32>
    %72 = arith.addf %71, %68 : vector<16x128xf32>
    %cst_66 = arith.constant 0.000000e+00 : f32
    %73 = vector.broadcast %cst_66 : f32 to vector<16x128xf32>
    %74 = arith.maximumf %72, %73 : vector<16x128xf32>
    %75 = vector.shape_cast %74 : vector<16x128xf32> to vector<1x16x128xf32>
    %76 = arith.truncf %75 : vector<1x16x128xf32> to vector<1x16x128xbf16>
    %c0_67 = arith.constant 0 : index
    %c0_68 = arith.constant 0 : index
    %c0_69 = arith.constant 0 : index
    %77 = vector.load %arg8[%c0_67, %c0_68, %c0_69] : memref<1x16x128xbf16, #tpu.memory_space<vmem>>, vector<1x16x128xbf16>
    tpu.vector_store %arg8[%c0_67, %c0_68, %c0_69], %76 {strides = array<i32>} : memref<1x16x128xbf16, #tpu.memory_space<vmem>>, vector<1x16x128xbf16>,
    return
  }
  func.func @transform_0(%arg0: i32) -> (i32, i32, i32) {
    %c0_i32 = arith.constant 0 : i32
    %c0_i32_0 = arith.constant 0 : i32
    %c0_i32_1 = arith.constant 0 : i32
    return %arg0, %c0_i32, %c0_i32_0 : i32, i32, i32
  }
  func.func @transform_1(%arg0: i32) -> (i32, i32) {
    %c0_i32 = arith.constant 0 : i32
    %c0_i32_0 = arith.constant 0 : i32
    %c0_i32_1 = arith.constant 0 : i32
    return %c0_i32, %c0_i32_0 : i32, i32
  }
  func.func @transform_2(%arg0: i32) -> (i32, i32, i32) {
    %c0_i32 = arith.constant 0 : i32
    %c0_i32_0 = arith.constant 0 : i32
    %c0_i32_1 = arith.constant 0 : i32
    %c0_i32_2 = arith.constant 0 : i32
    return %c0_i32, %c0_i32_0, %c0_i32_1 : i32, i32, i32
  }
  func.func @transform_3(%arg0: i32) -> (i32, i32) {
    %c0_i32 = arith.constant 0 : i32
    %c0_i32_0 = arith.constant 0 : i32
    %c0_i32_1 = arith.constant 0 : i32
    return %c0_i32, %c0_i32_0 : i32, i32
  }
  func.func @transform_4(%arg0: i32) -> (i32, i32) {
    %c0_i32 = arith.constant 0 : i32
    %c0_i32_0 = arith.constant 0 : i32
    %c0_i32_1 = arith.constant 0 : i32
    return %c0_i32, %c0_i32_0 : i32, i32
  }
  func.func @transform_5(%arg0: i32) -> (i32, i32) {
    %c0_i32 = arith.constant 0 : i32
    %c0_i32_0 = arith.constant 0 : i32
    %c0_i32_1 = arith.constant 0 : i32
    return %c0_i32, %c0_i32_0 : i32, i32
  }
  func.func @transform_6(%arg0: i32) -> (i32, i32) {
    %c0_i32 = arith.constant 0 : i32
    %c0_i32_0 = arith.constant 0 : i32
    %c0_i32_1 = arith.constant 0 : i32
    return %c0_i32, %c0_i32_0 : i32, i32
  }
  func.func @transform_7(%arg0: i32) -> (i32, i32, i32) {
    %c0_i32 = arith.constant 0 : i32
    %c0_i32_0 = arith.constant 0 : i32
    %c0_i32_1 = arith.constant 0 : i32
    return %arg0, %c0_i32, %c0_i32_0 : i32, i32, i32
  }
}

</mosaic_0001>

<bundles_post_ra>
// kernel: tpu_custom_call.1
= control target key start
LH: loop header
LB: loop body
LE: loop exit
PB: predicated region body
PF: predicated region fallthrough
CT: control target
= control target key end

     0   :  { %12 = vsyncpa [#allocation4], 0  ;;  %s2735_s0 = inlined_call_operand.hbm [shape: bf16[2,16,128], index: 0, kind: input, shape index: {}]   ;;  %s2736_s1 = inlined_call_operand.hbm [shape: bf16[128,128], index: 1, kind: input, shape index: {}]   ;;  %s2737_s2 = inlined_call_operand.hbm [shape: bf16[7,128,128], index: 2, kind: input, shape index: {}]   ;;  %s2738_s3 = inlined_call_operand.hbm [shape: bf16[128,128], index: 3, kind: input, shape index: {}]   ;;  %s2739_s4 = inlined_call_operand.vmem [shape: f32[1,128], index: 4, kind: input, shape index: {}]   ;;  %s2740_s5 = inlined_call_operand.vmem [shape: f32[1,128], index: 5, kind: input, shape index: {}]   ;;  %s2741_s6 = inlined_call_operand.vmem [shape: f32[1,128], index: 6, kind: input, shape index: {}]   ;;  %s2742_s7 = inlined_call_operand.hbm [shape: bf16[2,16,128], index: 7, kind: output, shape index: {}]  }
   0x1   :  { %14 = vsyncpa [#allocation4 + $0x1], 0 }
   0x2   :  { %15 = vsyncpa [#allocation7], 0 }
   0x3   :  { %16 = vsyncpa [#allocation10], 0 }
   0x4   :  { %17 = vsyncpa [#allocation5], 0 }
   0x5   :  { %19 = vsyncpa [#allocation5 + $0x1], 0  ;;  %s2357_s24 = smov 0   ;;  %s2359_s25 = smov 0  }
   0x6   :  { %s2361_s26 = smov 0   ;;  %s2363_s27 = smov 0  }
   0x7 LB: > { %s2378_s28 = sadd.s32 4294967295, %s2303_s27   ;;  %s1586_s29 = sadd.s32 4294967294, %s2303_s27   ;;  %s2303_s27 = sphi %s2363_s27, %s2768_s27   ;;  %s2299_s26 = sphi %s2361_s26, %s2767_s26   ;;  %s2295_s25 = sphi %s2359_s25, %s2766_s25   ;;  %s2291_s24 = sphi %s2357_s24, %s2765_s24  }
   0x8   : > { %p45_p0 = scmp.ne.s32.totalorder %s2295_s25, %s2291_s24  ;;  %p2743_p1 = scmp.eq.s32.totalorder %s2378_s28, 0 }
   0x9   : > { %p201_p3 = scmp.eq.s32.totalorder %s1586_s29, 1  ;;  %p1587_p5 = scmp.ge.s32.totalorder %s2303_s27, 1 }
   0xa   : > { %p2387_p4 = por %p2743_p1, %p45_p0  ;;  %p208_p7 = scmp.lt.s32.totalorder %s2303_s27, 3 }
   0xb   : > { %p2392_p6 = por %p201_p3, %p45_p0  ;;  %s2305_s10 = smov [#allocation6]  }
   0xc   : > { %s2747_s30 = scalar_select %p2387_p4, 1, 0 }
   0xd   : > { %s2748_s8 = scalar_select %p2392_p6, 1, 0 }
   0xe   : > { %p2397_p8 = pnand %p1587_p5, %p208_p7  ;;  %s220_s11 = sshll.u32 %s2305_s10, 4  ;;  %s2401_s11 = int_to_ptr.vmem [resolvable:$true] %s220_s11 }
   0xf   : > { %2749 = sst [smem:[#allocation16_spill]] %s2748_s8  ;;  %s2306_s13 = smov [#allocation8]  }
  0x10   : > { %s2750_s9 = scalar_select %p2397_p8, 1, 0 }
  0x11   : > { %p1974_p9 = pneg %p2397_p8  ;;  %s233_s14 = sshll.u32 %s2306_s13, 4  ;;  %s2412_s14 = int_to_ptr.vmem [resolvable:$true] %s233_s14 }
  0x12   : > { %s2307_s15 = smov [#allocation9]   ;;  %s2115_s19 = scalar_lea.hbm %s2736_s1, 1024 }
  0x13   : > { %p2408_p11 = pnand %p1974_p9, %p2743_p1  ;;  %s2414_s16 = sshll.u32 %s2307_s15, 4  ;;  %s247_s16 = int_to_ptr.vmem [resolvable:$true] %s2414_s16 }
  0x14   : > { %p2116_p12 = scmp.ne.s32.totalorder %s2736_s1, %s2115_s19  ;;  %p2122_p5 = scmp.lt.u32.totalorder %s2115_s19, %s2736_s1 }
  0x15   : > { %p2424_p13 = pneg %p2408_p11 }
  0x17   : > { %p2118_p0 = pnand %p2424_p13, %p2116_p12 }
  0x19   : > { %p2119_p3 = pneg %p2118_p0 }
  0x1b   : > { %p2124_p7 = pnand %p2122_p5, %p2119_p3 }
  0x1d   : > { %2127 = shalt.err (!%p2124_p7)
}
  0x1e   : > { %s2128_s10 = scalar_lea.vmem %s2401_s11, 1024  ;;  %p2136_p2 = scmp.lt.s32.totalorder %s2401_s11, %s2401_s11 }
  0x1f   : > { %p2129_p9 = scmp.ne.s32.totalorder %s2401_s11, %s2128_s10  ;;  %p2137_p6 = scmp.lt.s32.totalorder %s2128_s10, %s2128_s10 }
  0x21   : > { %p2131_p10 = pnand %p2129_p9, %p2424_p13  ;;  %p2138_p12 = por %p2137_p6, %p2136_p2 }
  0x23   : > { %p2132_p1 = pneg %p2131_p10 }
  0x25   : > { %p2139_p0 = pnand %p2138_p12, %p2132_p1 }
  0x27   : > { %2142 = shalt.err (!%p2139_p0)
}
  0x28   : > { %s2308_s13 = smov 64   ;;  %s2309_s15 = smov 4  }
  0x29   : > { %1977 = dma.hbm_to_vmem [thread:$0]  (!%p2408_p11), %s2736_s1, 1024, %s2401_s11, [#allocation7], %s2308_s13, %s2308_s13, %s2309_s15  }
  0x2a   : > { %s2143_s21 = scalar_lea.hbm %s2737_s2, 7168 }
  0x2b   : > { %p2144_p1 = scmp.ne.s32.totalorder %s2737_s2, %s2143_s21  ;;  %p2150_p10 = scmp.lt.u32.totalorder %s2143_s21, %s2737_s2 }
  0x2d   : > { %p2146_p2 = pnand %p2144_p1, %p2424_p13 }
  0x2f   : > { %p2147_p6 = pneg %p2146_p2 }
  0x31   : > { %p2152_p3 = pnand %p2150_p10, %p2147_p6 }
  0x33   : > { %2155 = shalt.err (!%p2152_p3)
}
  0x34   : > { %s2156_s11 = scalar_lea.vmem %s2412_s14, 7168  ;;  %p2164_p12 = scmp.lt.s32.totalorder %s2412_s14, %s2412_s14 }
  0x35   : > { %p2157_p5 = scmp.ne.s32.totalorder %s2412_s14, %s2156_s11  ;;  %p2165_p0 = scmp.lt.s32.totalorder %s2156_s11, %s2156_s11 }
  0x37   : > { %p2159_p7 = pnand %p2157_p5, %p2424_p13  ;;  %p2166_p1 = por %p2165_p0, %p2164_p12 }
  0x39   : > { %p2160_p9 = pneg %p2159_p7 }
  0x3b   : > { %p2167_p2 = pnand %p2166_p1, %p2160_p9 }
  0x3d   : > { %2170 = shalt.err (!%p2167_p2)
}
  0x3e   : > { %1980 = dma.hbm_to_vmem [thread:$0]  (!%p2408_p11), %s2737_s2, 7168, %s2412_s14, [#allocation7], %s2308_s13, %s2308_s13, %s2309_s15  }
  0x3f   : > { %s2171_s20 = scalar_lea.hbm %s2738_s3, 1024 }
  0x40   : > { %p2172_p6 = scmp.ne.s32.totalorder %s2738_s3, %s2171_s20  ;;  %p2178_p5 = scmp.lt.u32.totalorder %s2171_s20, %s2738_s3 }
  0x42   : > { %p2174_p10 = pnand %p2172_p6, %p2424_p13 }
  0x44   : > { %p2175_p3 = pneg %p2174_p10 }
  0x46   : > { %p2180_p7 = pnand %p2178_p5, %p2175_p3 }
  0x48   : > { %2183 = shalt.err (!%p2180_p7)
}
  0x49   : > { %s2184_s11 = scalar_lea.vmem %s247_s16, 1024  ;;  %p2192_p1 = scmp.lt.s32.totalorder %s247_s16, %s247_s16 }
  0x4a   : > { %p2185_p9 = scmp.ne.s32.totalorder %s247_s16, %s2184_s11  ;;  %p2193_p2 = scmp.lt.s32.totalorder %s2184_s11, %s2184_s11 }
  0x4c   : > { %p2187_p12 = pnand %p2185_p9, %p2424_p13  ;;  %p2194_p4 = por %p2193_p2, %p2192_p1 }
  0x4e   : > { %p2188_p0 = pneg %p2187_p12 }
  0x50   : > { %p2195_p8 = pnand %p2194_p4, %p2188_p0 }
  0x52   : > { %2198 = shalt.err (!%p2195_p8)
}
  0x53   : > { %1983 = dma.hbm_to_vmem [thread:$0]  (!%p2408_p11), %s2738_s3, 1024, %s247_s16, [#allocation10], %s2308_s13, %s2308_s13, %s2309_s15  }
  0x54   : > { %s2497_s22 = sadd.s32 1, %s2303_s27   ;;  %s32_s17 = sadd.s32 1, %s2299_s26 }
  0x55   : > { %s29_s12 = ssub.s32 %s2303_s27, %s2497_s22  ;;  %p39_p8 = scmp.ne.s32.totalorder %s2299_s26, %s2295_s25 }
  0x56   : > { %p30_p4 = scmp.eq.s32.totalorder %s29_s12, 0  ;;  %p40_p13 = scmp.eq.s32.totalorder %s2303_s27, 0 }
  0x57   : > { %p1995_p6 = scmp.lt.s32.totalorder %s2303_s27, 2  ;;  %p2753_p3 = scmp.eq.s32.totalorder %s2378_s28, 1 }
  0x58   : > { %s2507_s18 = scalar_select %p30_p4, %s2299_s26, %s32_s17  }
  0x59   : > { %p41_p10 = por %p40_p13, %p39_p8  ;;  %p2511_p5 = por %p2753_p3, %p39_p8 }
  0x5a   : > { %s269_s20 = sand.u32 1, %s2299_s26   ;;  %s1684_s21 = sshll.u32 %s2303_s27, 7 }
  0x5b   : > { %s1592_s16 = sshll.u32 %s269_s20, 3  ;;  %s2520_s10 = scalar_lea.hbm %s2735_s0, %s1684_s21 }
  0x5c   : > { %s273_s11 = scalar_lea.vmem [#allocation3], %s1592_s16  ;;  %p2522_p11 = pnand %p1995_p6, %p41_p10 }
  0x5d   : > { %s280_s14 = sshll.u32 %s273_s11, 4  ;;  %s2528_s12 = scalar_lea.sflag [#allocation4], %s269_s20  ;;  %s2526_s14 = int_to_ptr.vmem [resolvable:$true] %s280_s14 }
  0x5e   : > { %s2199_s17 = scalar_lea.hbm %s2520_s10, 128  ;;  %p2201_p9 = pneg %p2522_p11 }
  0x5f   : > { %p2200_p7 = scmp.ne.s32.totalorder %s2520_s10, %s2199_s17  ;;  %s2204_s23 = scalar_lea.hbm %s2735_s0, 256 }
  0x60   : > { %p2205_p1 = scmp.lt.u32.totalorder %s2520_s10, %s2735_s0  ;;  %p2206_p2 = scmp.lt.u32.totalorder %s2204_s23, %s2199_s17 }
  0x61   : > { %p2202_p12 = pnand %p2201_p9, %p2200_p7  ;;  %p2208_p8 = scmp.lt.u32.totalorder %s2199_s17, %s2520_s10 }
  0x62   : > { %p2207_p4 = por %p2206_p2, %p2205_p1 }
  0x63   : > { %p2203_p0 = pneg %p2202_p12 }
  0x64   : > { %p2209_p13 = por %p2208_p8, %p2207_p4 }
  0x66   : > { %p2210_p6 = pnand %p2209_p13, %p2203_p0 }
  0x68   : > { %2213 = shalt.err (!%p2210_p6)
}
  0x69   : > { %s2214_s20 = scalar_lea.vmem %s2526_s14, 128  ;;  %s2310_s21 = smov [#allocation3]  }
  0x6a   : > { %p2215_p10 = scmp.ne.s32.totalorder %s2526_s14, %s2214_s20  ;;  %s2219_s16 = sshll.u32 %s2310_s21, 4  ;;  %s2220_s16 = int_to_ptr.vmem [resolvable:$false] %s2219_s16 }
  0x6b   : > { %s2221_s29 = scalar_lea.vmem %s2220_s16, 256  ;;  %p2222_p12 = scmp.lt.s32.totalorder %s2526_s14, %s2220_s16 }
  0x6c   : > { %p2217_p3 = pnand %p2215_p10, %p2201_p9  ;;  %p2223_p1 = scmp.lt.s32.totalorder %s2221_s29, %s2214_s20 }
  0x6e   : > { %p2218_p7 = pneg %p2217_p3  ;;  %p2224_p2 = por %p2223_p1, %p2222_p12 }
  0x70   : > { %p2225_p4 = pnand %p2224_p2, %p2218_p7 }
  0x72   : > { %2228 = shalt.err (!%p2225_p4)
}
  0x73   : > { %1987 = dma.hbm_to_vmem [thread:$0]  (!%p2522_p11), %s2520_s10, 128, %s2526_s14, %s2528_s12, %s2308_s13, %s2308_s13, %s2309_s15  }
  0x74   : > { %p2756_p9 = scmp.ne.s32.totalorder %s2750_s9, 0 }
  0x75   : > { %s2562_s17 = sand.u32 (!%p2756_p9), 1, %s2295_s25   ;;  %p2757_p0 = scmp.ne.s32.totalorder (!%p2756_p9), %s2747_s30, 0 }
  0x76   : > { %292 = sbr.rel (%p2756_p9) target bundleno = 955 (0x3bb), region = 48  ;;  %s1596_s23 = sshll.u32 (!%p2756_p9), %s2562_s17, 3 }
  0x77   : > { %s295_s11 = scalar_lea.sflag (!%p2756_p9), [#allocation4], %s2562_s17  ;;  %s2568_s8 = scalar_lea.vmem (!%p2756_p9), [#allocation3], %s1596_s23 }
  0x7d   : > { %2274 = dma.done.wait (%p2757_p0), %s295_s11, 128  }
  0x7e   : > { %2276 = vsyncadd (%p2757_p0), %s295_s11, 4294967168  ;;  %p2758_p11 = scmp.eq.s32.totalorder %s2378_s28, 0 }
  0x80   : > { %2278 = dma.done.wait (%p2758_p11), [#allocation7], 8192   ;;  %p2759_p8 = pmov %p2758_p11 }
  0x82   : > { %2280 = vsyncadd (%p2759_p8), [#allocation7], 4294959104  ;;  %p2760_p13 = pmov %p2759_p8 }
  0x83   : > { %p2761_p6 = pmov %p2759_p8 }
  0x84   : > { %2282 = dma.done.wait (%p2760_p13), [#allocation10], 1024  }
  0x85   : > { %2284 = vsyncadd (%p2761_p6), [#allocation10], 4294966272  ;;  %v2311_v0 = vmov 0.0   ;;  %vm2312_vm0 = vmmov 0   ;;  %v2042_v1 = vld [vmem:[#allocation6] sm:$0xff]   ;;  %v2043_v2 = vld [vmem:[#allocation6 + $0x8] sm:$0xff]  }
  0x86   : > { %1778 = vmatprep.subr.bf16.mxu0 %v2311_v0  ;;  %1794 = vmatprep.mubr.msk.bf16.mxu0 %vm2312_vm0, %v2311_v0  ;;  %v2044_v3 = vld [vmem:[#allocation6 + $0x10] sm:$0xff]   ;;  %v2051_v4 = vld [vmem:[#allocation8 + $0x40] sm:$0xff]   ;;  %v2045_v5 = vld [vmem:[#allocation6 + $0x18] sm:$0xff]   ;;  %v2313_v23 = vmov 0   ;;  %vm510_vm1 = vcmask 1044480   ;;  %vm860_vm4 = vcmask 1043456  }
  0x87   : > { %1798 = vmatprep.subr.bf16.mxu1 %v2311_v0  ;;  %1814 = vmatprep.mubr.msk.bf16.mxu1 %vm2312_vm0, %v2311_v0  ;;  %v2052_v6 = vld [vmem:[#allocation8 + $0x48] sm:$0xff]   ;;  %v2046_v7 = vld [vmem:[#allocation6 + $0x20] sm:$0xff]   ;;  %v2054_v8 = vld [vmem:[#allocation8 + $0x50] sm:$0xff]   ;;  %464 = vst [vmem:[#allocation2] sm:$0xf] %v2313_v23  ;;  %vm1104_vm6 = vcmask 1042432  }
  0x88   : > { %1779 = vmatpush3.bf16.msra.mxu0 %v2042_v1  ;;  %1799 = vmatpush3.bf16.msra.mxu1 %v2051_v4  ;;  %v2047_v9 = vld [vmem:[#allocation6 + $0x28] sm:$0xff]   ;;  %v2048_v10 = vld [vmem:[#allocation6 + $0x30] sm:$0xff]   ;;  %v2049_v11 = vld [vmem:[#allocation6 + $0x38] sm:$0xff]   ;;  %465 = vst [vmem:[#allocation2 + $0x8] sm:$0xf0] %v2313_v23  ;;  %s1687_s12 = sshll.u32 %s2378_s28, 7 }
  0x89   : > { %1780 = vmatprep.subr.bf16.mxu0 %v2311_v0  ;;  %1800 = vmatprep.subr.bf16.mxu1 %v2311_v0  ;;  %v2050_v12 = vld [vmem:[%s2568_s8] sm:$0xff]   ;;  %v2053_v13 = vld [vmem:[#allocation8] sm:$0xff]   ;;  %v2055_v14 = vld [vmem:[#allocation8 + $0x8] sm:$0xff]   ;;  %vm604_vm2 = vsmask.f32 5376  ;;  %s340_s20 = scalar_lea.vmem [#allocation11], %s1596_s23  ;;  %s2689_s11 = scalar_lea.hbm %s2742_s7, %s1687_s12 }
  0x8a   : > { %v2056_v15 = vld [vmem:[#allocation8 + $0x58] sm:$0xff]   ;;  %v2057_v16 = vld [vmem:[#allocation8 + $0x10] sm:$0xff]   ;;  %v2058_v17 = vld [vmem:[#allocation8 + $0x60] sm:$0xff]   ;;  %vm730_vm3 = vsmask.f32 4352  ;;  %s1484_s21 = sshll.u32 %s340_s20, 4  ;;  %s2691_s21 = int_to_ptr.vmem [resolvable:$true] %s1484_s21 }
  0x8b   : > { %v2059_v18 = vld [vmem:[#allocation8 + $0x18] sm:$0xff]   ;;  %v2060_v19 = vld [vmem:[#allocation8 + $0x68] sm:$0xff]   ;;  %v2061_v20 = vld [vmem:[#allocation8 + $0x20] sm:$0xff]   ;;  %vm974_vm5 = vsmask.f32 3328  ;;  %s2229_s30 = scalar_lea.vmem %s2691_s21, 128 }
  0x8c   : > { %1781 = vmatpush3.bf16.msra.mxu0 %v2043_v2  ;;  %1801 = vmatpush3.bf16.msra.mxu1 %v2052_v6  ;;  %v2062_v21 = vld [vmem:[#allocation8 + $0x70] sm:$0xff]   ;;  %v2063_v22 = vld [vmem:[#allocation8 + $0x28] sm:$0xff]   ;;  %v2064_v24 = vld [vmem:[#allocation8 + $0x78] sm:$0xff]   ;;  %vm1218_vm7 = vsmask.f32 2304  ;;  %p2230_p10 = scmp.ne.s32.totalorder %s2691_s21, %s2229_s30  ;;  %s2314_s28 = smov [#allocation11]  }
  0x8d   : > { %1782 = vmatprep.subr.bf16.mxu0 %v2311_v0  ;;  %1802 = vmatprep.subr.bf16.mxu1 %v2311_v0  ;;  %v2065_v25 = vld [vmem:[#allocation8 + $0x30] sm:$0xff]   ;;  %v2066_v26 = vld [vmem:[#allocation8 + $0x38] sm:$0xff]   ;;  %v1601_v27 = vld [vmem:[%s2739_s4] ss:$0 sm:$0xff]  ;;  %s2233_s23 = sshll.u32 %s2314_s28, 4  ;;  %s2234_s23 = int_to_ptr.vmem [resolvable:$false] %s2233_s23 }
  0x8e   : > { %v2067_v43 = vld [vmem:[#allocation8 + $0x80] sm:$0xff]   ;;  %v2068_v54 = vld [vmem:[#allocation8 + $0x88] sm:$0xff]   ;;  %v2070_v58 = vld [vmem:[#allocation8 + $0x90] sm:$0xff]   ;;  %p2231_p3 = pnand %p2230_p10, %p2511_p5  ;;  %s2235_s9 = scalar_lea.vmem %s2234_s23, 256 }
  0x8f   : > { %v2069_v56 = vld [vmem:[#allocation8 + $0xc0] sm:$0xff]   ;;  %v2071_v59 = vld [vmem:[#allocation8 + $0xc8] sm:$0xff]   ;;  %v2072_v60 = vld [vmem:[#allocation8 + $0x98] sm:$0xff]   ;;  %p2236_p12 = scmp.lt.s32.totalorder %s2691_s21, %s2234_s23  ;;  %p2237_p1 = scmp.lt.s32.totalorder %s2235_s9, %s2229_s30 }
  0x90   : > { %1783 = vmatpush3.bf16.msra.mxu0 %v2044_v3  ;;  %1803 = vmatpush3.bf16.msra.mxu1 %v2054_v8  ;;  %v2073_v61 = vld [vmem:[#allocation8 + $0xd0] sm:$0xff]   ;;  %v2074_v62 = vld [vmem:[#allocation8 + $0xa0] sm:$0xff]   ;;  %v2075_v63 = vld [vmem:[#allocation8 + $0xd8] sm:$0xff]   ;;  %p2232_p7 = pneg %p2231_p3 }
  0x91   : > { %1784 = vmatprep.subr.bf16.mxu0 %v2311_v0  ;;  %1804 = vmatprep.subr.bf16.mxu1 %v2311_v0  ;;  %v2076_v2 = vld [vmem:[#allocation8 + $0xa8] sm:$0xff]   ;;  %v2077_v3 = vld [vmem:[#allocation8 + $0xe0] sm:$0xff]   ;;  %v2078_v8 = vld [vmem:[#allocation8 + $0xb0] sm:$0xff]   ;;  %p2238_p2 = por %p2237_p1, %p2236_p12 }
  0x93   : > { %p2239_p4 = pnand %p2238_p2, %p2232_p7 }
  0x94   : > { %1785 = vmatpush3.bf16.msra.mxu0 %v2045_v5  ;;  %1805 = vmatpush3.bf16.msra.mxu1 %v2056_v15  ;;  %v2081_v15 = vld [vmem:[#allocation8 + $0xf0] sm:$0xff]  }
  0x95   : > { %1786 = vmatprep.subr.bf16.mxu0 %v2311_v0  ;;  %1806 = vmatprep.subr.bf16.mxu1 %v2311_v0 }
  0x98   : > { %1787 = vmatpush3.bf16.msra.mxu0 %v2046_v7  ;;  %1807 = vmatpush3.bf16.msra.mxu1 %v2058_v17 }
  0x99   : > { %1788 = vmatprep.subr.bf16.mxu0 %v2311_v0  ;;  %1808 = vmatprep.subr.bf16.mxu1 %v2311_v0 }
  0x9c   : > { %1789 = vmatpush3.bf16.msra.mxu0 %v2047_v9  ;;  %1809 = vmatpush3.bf16.msra.mxu1 %v2060_v19  ;;  %v2079_v9 = vld [vmem:[#allocation8 + $0xe8] sm:$0xff]  }
  0x9d   : > { %1790 = vmatprep.subr.bf16.mxu0 %v2311_v0  ;;  %1810 = vmatprep.subr.bf16.mxu1 %v2311_v0 }
  0xa0   : > { %1791 = vmatpush3.bf16.msra.mxu0 %v2048_v10  ;;  %1811 = vmatpush3.bf16.msra.mxu1 %v2062_v21 }
  0xa1   : > { %1792 = vmatprep.subr.bf16.mxu0 %v2311_v0  ;;  %1812 = vmatprep.subr.bf16.mxu1 %v2311_v0 }
  0xa4   : > { %1793 = vmatpush3.bf16.msra.mxu0 %v2049_v11  ;;  %1813 = vmatpush3.bf16.msra.mxu1 %v2064_v24  ;;  %v2084_v24 = vld [vmem:[#allocation8 + $0x108] sm:$0xff]  }
  0xa5   : > { %1818 = vmatprep.subr.bf16.mxu0 %v2311_v0  ;;  %1838 = vmatprep.subr.bf16.mxu1 %v2311_v0 }
  0xa7   : > { %1795 = vmatmul.mubr.bf16.vlgmr.msra.gmra.mrb[0].mxu0 %v2050_v12 }
  0xa8   : > { %1819 = vmatpush3.bf16.msra.mxu0 %v2053_v13  ;;  %1834 = vmatprep.mubr.msk.bf16.mxu0 %vm2312_vm0, %v2311_v0 }
  0xa9   : > { %1820 = vmatprep.subr.bf16.mxu0 %v2311_v0 }
  0xac   : > { %1821 = vmatpush3.bf16.msra.mxu0 %v2055_v14  ;;  %v2080_v14 = vld [vmem:[#allocation8 + $0xb8] sm:$0xff]  }
  0xad   : > { %1822 = vmatprep.subr.bf16.mxu0 %v2311_v0 }
  0xb0   : > { %1823 = vmatpush3.bf16.msra.mxu0 %v2057_v16 }
  0xb1   : > { %1824 = vmatprep.subr.bf16.mxu0 %v2311_v0 }
  0xb4   : > { %1825 = vmatpush3.bf16.msra.mxu0 %v2059_v18  ;;  %v2083_v18 = vld [vmem:[#allocation8 + $0x100] sm:$0xff]  }
  0xb5   : > { %1826 = vmatprep.subr.bf16.mxu0 %v2311_v0 }
  0xb8   : > { %1827 = vmatpush3.bf16.msra.mxu0 %v2061_v20  ;;  %v2082_v20 = vld [vmem:[#allocation8 + $0xf8] sm:$0xff]  }
  0xb9   : > { %1828 = vmatprep.subr.bf16.mxu0 %v2311_v0 }
  0xbc   : > { %1829 = vmatpush3.bf16.msra.mxu0 %v2063_v22 }
  0xbd   : > { %1830 = vmatprep.subr.bf16.mxu0 %v2311_v0 }
  0xc0   : > { %1831 = vmatpush3.bf16.msra.mxu0 %v2065_v25  ;;  %v2085_v25 = vld [vmem:[#allocation8 + $0x140] sm:$0xff]  }
  0xc1   : > { %1832 = vmatprep.subr.bf16.mxu0 %v2311_v0 }
  0xc4   : > { %1833 = vmatpush3.bf16.msra.mxu0 %v2066_v26 }
  0xc5   : > { %1858 = vmatprep.subr.bf16.mxu0 %v2311_v0 }
 0x17a   : > { %v455_v28 = vpop.f32.mrb[0].mxu0 }
 0x17b   : > { %v456_v29 = vadd.f32 %v1601_v27, %v455_v28  ;;  %v1796_v30 = vpop.f32.mrb[1].mxu0  ;;  %v2087_v28 = vld [vmem:[#allocation8 + $0x148] sm:$0xff]  }
 0x17c   : > { %v458_v31 = vpop.f32.mrb[2].mxu0  ;;  %v2089_v30 = vld [vmem:[#allocation8 + $0x150] sm:$0xff]  }
 0x17d   : > { %v459_v32 = vadd.f32 %v1601_v27, %v458_v31  ;;  %v1797_v33 = vpop.f32.mrb[3].mxu0  ;;  %v462_v34 = vmax.f32 %v456_v29, 0.0  ;;  %v2086_v27 = vld [vmem:[#allocation8 + $0x110] sm:$0xff]   ;;  %v2088_v29 = vld [vmem:[#allocation8 + $0x118] sm:$0xff]   ;;  %v2090_v31 = vld [vmem:[#allocation8 + $0x120] sm:$0xff]  }
 0x17f   : > { %v463_v35 = vmax.f32 %v459_v32, 0.0  ;;  %v2091_v32 = vld [vmem:[#allocation8 + $0x158] sm:$0xff]  }
 0x181   : > { %v466_v36 = vpack.c.bf16 %v463_v35, %v462_v34  ;;  %v2092_v34 = vld [vmem:[#allocation8 + $0x128] sm:$0xff]   ;;  %v2093_v35 = vld [vmem:[#allocation8 + $0x160] sm:$0xff]  }
 0x183   : > { %v468_v37 = vrot.slane %v466_v36, 4 }
 0x185   : > { %470 = vst [vmem:[#allocation2 + $0x8] ss:$-4 sps:$4 sm:$0xff] %v468_v37  }
 0x18c   : > { %v473_v38 = vld [vmem:[#allocation2 + $0x8] sm:$0x7]  ;;  %v490_v39 = vld [vmem:[#allocation2] sm:$0xf8] }
 0x18d   : > { %v472_v40 = vld [vmem:[#allocation2] sm:$0xfc]  ;;  %v511_v41 = vrot.slane %v490_v39, 3  ;;  %v512_v42 = vrot.slane %v473_v38, 3  ;;  %v614_v46 = vshrl.u32 %v473_v38, 16  ;;  %v617_v47 = vshll.u32 %v473_v38, 16 }
 0x18e   : > { %v606_v44 = vshrl.u32 %v472_v40, 16  ;;  %v609_v45 = vshll.u32 %v472_v40, 16  ;;  %v712_v1 = vld [vmem:[#allocation2 + $0x8] sm:$0xf]  ;;  %v732_v4 = vshrl.u32 %v490_v39, 16  ;;  %v735_v5 = vshll.u32 %v490_v39, 16 }
 0x18f   : > { %v513_v48 = vsel %vm510_vm1, %v511_v41, %v512_v42  ;;  %v616_v51 = vrot.slane %v614_v46, 2  ;;  %v619_v52 = vrot.slane %v617_v47, 3  ;;  %v740_v6 = vshrl.u32 %v712_v1, 16  ;;  %v840_v19 = vld [vmem:[#allocation2] sm:$0xf0]  ;;  %v2094_v40 = vld [vmem:[#allocation8 + $0x130] sm:$0xff]  }
 0x190   : > { %v608_v49 = vrot.slane %v606_v44, 2  ;;  %v611_v50 = vrot.slane %v609_v45, 3  ;;  %1815 = vmatmul.mubr.bf16.vlgmr.msra.gmra.mrb[0].mxu1 %v513_v48  ;;  %v743_v7 = vshll.u32 %v712_v1, 16  ;;  %v734_v10 = vrot.slane %v732_v4, 3  ;;  %v956_v33 = vld [vmem:[#allocation2 + $0x8] sm:$0x1f] }
 0x191   : > { %1839 = vmatpush3.bf16.msra.mxu1 %v2067_v43  ;;  %1854 = vmatprep.mubr.msk.bf16.mxu1 %vm2312_vm0, %v2311_v0  ;;  %v620_v55 = vor.u32 %v619_v52, %v616_v51  ;;  %v737_v11 = vrot.slane %v735_v5, 4  ;;  %v742_v12 = vrot.slane %v740_v6, 3  ;;  %v861_v22 = vrot.slane %v840_v19, 4  ;;  %v2095_v41 = vld [vmem:[#allocation8 + $0x168] sm:$0xff]   ;;  %v2096_v46 = vld [vmem:[#allocation8 + $0x138] sm:$0xff]   ;;  %v2097_v47 = vld [vmem:[#allocation8 + $0x170] sm:$0xff]  }
 0x192   : > { %v612_v53 = vor.u32 %v611_v50, %v608_v49  ;;  %1840 = vmatprep.subr.bf16.mxu1 %v2311_v0  ;;  %v745_v13 = vrot.slane %v743_v7, 4  ;;  %v862_v23 = vrot.slane %v712_v1, 4  ;;  %v976_v36 = vshrl.u32 %v840_v19, 16  ;;  %v2099_v50 = vld [vmem:[#allocation8 + $0x180] sm:$0xff]   ;;  %v2098_v52 = vld [vmem:[#allocation8 + $0x178] sm:$0xff]   ;;  %v2105_v4 = vld [vmem:[#allocation8 + $0x1b0] sm:$0xff]  }
 0x193   : > { %v738_v16 = vor.u32 %v737_v11, %v734_v10  ;;  %v979_v37 = vshll.u32 %v840_v19, 16  ;;  %v984_v38 = vshrl.u32 %v956_v33, 16  ;;  %v987_v39 = vshll.u32 %v956_v33, 16  ;;  %v1084_v51 = vld [vmem:[#allocation2] sm:$0xe0]  ;;  %v2113_v19 = vld [vmem:[#allocation9 + $0x30] sm:$0xff]  }
 0x194   : > { %v621_v57 = vsel %vm604_vm2, %v612_v53, %v620_v55  ;;  %v746_v17 = vor.u32 %v745_v13, %v742_v12  ;;  %v863_v26 = vsel %vm860_vm4, %v861_v22, %v862_v23  ;;  %v978_v42 = vrot.slane %v976_v36, 4  ;;  %v2107_v13 = vld [vmem:[#allocation9] sm:$0xff]  }
 0x195   : > { %1835 = vmatmul.mubr.bf16.vlgmr.msra.gmra.mrb[4].mxu0 %v621_v57  ;;  %1841 = vmatpush3.bf16.msra.mxu1 %v2068_v54  ;;  %v981_v43 = vrot.slane %v979_v37, 5  ;;  %v986_v44 = vrot.slane %v984_v38, 4  ;;  %v989_v45 = vrot.slane %v987_v39, 5  ;;  %v1105_v54 = vrot.slane %v1084_v51, 5 }
 0x196   : > { %1859 = vmatpush3.bf16.msra.mxu0 %v2069_v56  ;;  %1842 = vmatprep.subr.bf16.mxu1 %v2311_v0  ;;  %v747_v21 = vsel %vm730_vm3, %v738_v16, %v746_v17  ;;  %v1106_v55 = vrot.slane %v956_v33, 5  ;;  %v2100_v56 = vld [vmem:[#allocation8 + $0x188] sm:$0xff]   ;;  %v1223_v1 = vshll.u32 %v1084_v51, 16  ;;  %v2110_v16 = vld [vmem:[#allocation9 + $0x18] sm:$0xff]   ;;  %v2111_v17 = vld [vmem:[#allocation9 + $0x20] sm:$0xff]  }
 0x197   : > { %1860 = vmatprep.subr.bf16.mxu0 %v2311_v0  ;;  %1874 = vmatprep.mubr.msk.bf16.mxu0 %vm2312_vm0, %v2311_v0  ;;  %v982_v48 = vor.u32 %v981_v43, %v978_v42  ;;  %v990_v49 = vor.u32 %v989_v45, %v986_v44 }
 0x198   : > { %v1107_v57 = vsel %vm1104_vm6, %v1105_v54, %v1106_v55  ;;  %v1225_v6 = vrot.slane %v1223_v1, 6  ;;  %v1667_v55 = vld [vmem:[%s2740_s5] ss:$0 sm:$0xff] }
 0x199   : > { %1843 = vmatpush3.bf16.msra.mxu1 %v2070_v58  ;;  %v991_v53 = vsel %vm974_vm5, %v982_v48, %v990_v49  ;;  %v2101_v58 = vld [vmem:[#allocation8 + $0x190] sm:$0xff]  }
 0x19a   : > { %1861 = vmatpush3.bf16.msra.mxu0 %v2071_v59  ;;  %1844 = vmatprep.subr.bf16.mxu1 %v2311_v0  ;;  %v2102_v59 = vld [vmem:[#allocation8 + $0x198] sm:$0xff]  }
 0x19b   : > { %1862 = vmatprep.subr.bf16.mxu0 %v2311_v0 }
 0x19d   : > { %1845 = vmatpush3.bf16.msra.mxu1 %v2072_v60  ;;  %v2103_v60 = vld [vmem:[#allocation8 + $0x1a0] sm:$0xff]  }
 0x19e   : > { %1863 = vmatpush3.bf16.msra.mxu0 %v2073_v61  ;;  %1846 = vmatprep.subr.bf16.mxu1 %v2311_v0  ;;  %v1200_v61 = vld [vmem:[#allocation2 + $0x8] sm:$0x3f] }
 0x19f   : > { %1864 = vmatprep.subr.bf16.mxu0 %v2311_v0 }
 0x1a1   : > { %1847 = vmatpush3.bf16.msra.mxu1 %v2074_v62  ;;  %v2104_v62 = vld [vmem:[#allocation8 + $0x1a8] sm:$0xff]  }
 0x1a2   : > { %1865 = vmatpush3.bf16.msra.mxu0 %v2075_v63  ;;  %1848 = vmatprep.subr.bf16.mxu1 %v2311_v0  ;;  %v1220_v63 = vshrl.u32 %v1084_v51, 16 }
 0x1a3   : > { %1866 = vmatprep.subr.bf16.mxu0 %v2311_v0 }
 0x1a4   : > { %v1222_v5 = vrot.slane %v1220_v63, 5 }
 0x1a5   : > { %1849 = vmatpush3.bf16.msra.mxu1 %v2076_v2  ;;  %v1228_v2 = vshrl.u32 %v1200_v61, 16 }
 0x1a6   : > { %1867 = vmatpush3.bf16.msra.mxu0 %v2077_v3  ;;  %1850 = vmatprep.subr.bf16.mxu1 %v2311_v0  ;;  %v1231_v3 = vshll.u32 %v1200_v61, 16  ;;  %v1226_v10 = vor.u32 %v1225_v6, %v1222_v5 }
 0x1a7   : > { %1868 = vmatprep.subr.bf16.mxu0 %v2311_v0  ;;  %v1230_v7 = vrot.slane %v1228_v2, 5 }
 0x1a9   : > { %1851 = vmatpush3.bf16.msra.mxu1 %v2078_v8  ;;  %v1233_v8 = vrot.slane %v1231_v3, 6  ;;  %v1689_v3 = vld [vmem:[%s2568_s8] sm:$0xff]   ;;  %s1471_s8 = scalar_lea.sflag [#allocation5], %s2562_s17 }
 0x1aa   : > { %1869 = vmatpush3.bf16.msra.mxu0 %v2079_v9  ;;  %1852 = vmatprep.subr.bf16.mxu1 %v2311_v0  ;;  %v2106_v9 = vld [vmem:[#allocation8 + $0x1b8] sm:$0xff]   ;;  %v1690_v5 = vunpack.c.l.bf16 %v1689_v3 }
 0x1ab   : > { %1870 = vmatprep.subr.bf16.mxu0 %v2311_v0  ;;  %v1234_v11 = vor.u32 %v1233_v8, %v1230_v7 }
 0x1ad   : > { %1853 = vmatpush3.bf16.msra.mxu1 %v2080_v14  ;;  %v1235_v12 = vsel %vm1218_vm7, %v1226_v10, %v1234_v11  ;;  %v2108_v14 = vld [vmem:[#allocation9 + $0x8] sm:$0xff]  }
 0x1ae   : > { %1871 = vmatpush3.bf16.msra.mxu0 %v2081_v15  ;;  %1878 = vmatprep.subr.bf16.mxu1 %v2311_v0  ;;  %v2109_v15 = vld [vmem:[#allocation9 + $0x10] sm:$0xff]  }
 0x1af   : > { %1872 = vmatprep.subr.bf16.mxu0 %v2311_v0 }
 0x1b0   : > { %1855 = vmatmul.mubr.bf16.vlgmr.msra.gmra.mrb[4].mxu1 %v747_v21 }
 0x1b1   : > { %1879 = vmatpush3.bf16.msra.mxu1 %v2083_v18  ;;  %1894 = vmatprep.mubr.msk.bf16.mxu1 %vm2312_vm0, %v2311_v0  ;;  %v2112_v18 = vld [vmem:[#allocation9 + $0x28] sm:$0xff]  }
 0x1b2   : > { %1873 = vmatpush3.bf16.msra.mxu0 %v2082_v20  ;;  %1880 = vmatprep.subr.bf16.mxu1 %v2311_v0  ;;  %v2114_v20 = vld [vmem:[#allocation9 + $0x38] sm:$0xff]  }
 0x1b3   : > { %1898 = vmatprep.subr.bf16.mxu0 %v2311_v0 }
 0x1b5   : > { %1875 = vmatmul.mubr.bf16.vlgmr.msra.gmra.mrb[8].mxu0 %v863_v26  ;;  %1881 = vmatpush3.bf16.msra.mxu1 %v2084_v24 }
 0x1b6   : > { %1899 = vmatpush3.bf16.msra.mxu0 %v2085_v25  ;;  %1882 = vmatprep.subr.bf16.mxu1 %v2311_v0 }
 0x1b7   : > { %1900 = vmatprep.subr.bf16.mxu0 %v2311_v0  ;;  %1914 = vmatprep.mubr.msk.bf16.mxu0 %vm2312_vm0, %v2311_v0 }
 0x1b9   : > { %1883 = vmatpush3.bf16.msra.mxu1 %v2086_v27 }
 0x1ba   : > { %1901 = vmatpush3.bf16.msra.mxu0 %v2087_v28  ;;  %1884 = vmatprep.subr.bf16.mxu1 %v2311_v0 }
 0x1bb   : > { %1902 = vmatprep.subr.bf16.mxu0 %v2311_v0 }
 0x1bd   : > { %1885 = vmatpush3.bf16.msra.mxu1 %v2088_v29 }
 0x1be   : > { %1903 = vmatpush3.bf16.msra.mxu0 %v2089_v30  ;;  %1886 = vmatprep.subr.bf16.mxu1 %v2311_v0 }
 0x1bf   : > { %1904 = vmatprep.subr.bf16.mxu0 %v2311_v0 }
 0x1c1   : > { %1887 = vmatpush3.bf16.msra.mxu1 %v2090_v31 }
 0x1c2   : > { %1905 = vmatpush3.bf16.msra.mxu0 %v2091_v32  ;;  %1888 = vmatprep.subr.bf16.mxu1 %v2311_v0 }
 0x1c3   : > { %1906 = vmatprep.subr.bf16.mxu0 %v2311_v0 }
 0x1c5   : > { %1889 = vmatpush3.bf16.msra.mxu1 %v2092_v34 }
 0x1c6   : > { %1907 = vmatpush3.bf16.msra.mxu0 %v2093_v35  ;;  %1890 = vmatprep.subr.bf16.mxu1 %v2311_v0 }
 0x1c7   : > { %1908 = vmatprep.subr.bf16.mxu0 %v2311_v0 }
 0x1c9   : > { %1891 = vmatpush3.bf16.msra.mxu1 %v2094_v40 }
 0x1ca   : > { %1909 = vmatpush3.bf16.msra.mxu0 %v2095_v41  ;;  %1892 = vmatprep.subr.bf16.mxu1 %v2311_v0 }
 0x1cb   : > { %1910 = vmatprep.subr.bf16.mxu0 %v2311_v0 }
 0x1cd   : > { %1893 = vmatpush3.bf16.msra.mxu1 %v2096_v46 }
 0x1ce   : > { %1911 = vmatpush3.bf16.msra.mxu0 %v2097_v47  ;;  %1918 = vmatprep.subr.bf16.mxu1 %v2311_v0 }
 0x1cf   : > { %1912 = vmatprep.subr.bf16.mxu0 %v2311_v0 }
 0x1d0   : > { %1895 = vmatmul.mubr.bf16.vlgmr.msra.gmra.mrb[8].mxu1 %v991_v53 }
 0x1d1   : > { %1919 = vmatpush3.bf16.msra.mxu1 %v2099_v50  ;;  %1934 = vmatprep.mubr.msk.bf16.mxu1 %vm2312_vm0, %v2311_v0 }
 0x1d2   : > { %1913 = vmatpush3.bf16.msra.mxu0 %v2098_v52  ;;  %1920 = vmatprep.subr.bf16.mxu1 %v2311_v0 }
 0x1d3   : > { %1938 = vmatprep.subr.bf16.mxu0 %v2311_v0 }
 0x1d5   : > { %1915 = vmatmul.mubr.bf16.vlgmr.msra.gmra.mrb[12].mxu0 %v1107_v57  ;;  %1921 = vmatpush3.bf16.msra.mxu1 %v2100_v56 }
 0x1d6   : > { %1922 = vmatprep.subr.bf16.mxu1 %v2311_v0  ;;  %1954 = vmatprep.mubr.msk.bf16.mxu0 %vm2312_vm0, %v2311_v0 }
 0x1d7   : > { %1939 = vmatpush3.bf16.msra.mxu0 %v2107_v13 }
 0x1d8   : > { %1940 = vmatprep.subr.bf16.mxu0 %v2311_v0 }
 0x1d9   : > { %1923 = vmatpush3.bf16.msra.mxu1 %v2101_v58 }
 0x1da   : > { %1924 = vmatprep.subr.bf16.mxu1 %v2311_v0 }
 0x1db   : > { %1941 = vmatpush3.bf16.msra.mxu0 %v2108_v14 }
 0x1dc   : > { %1942 = vmatprep.subr.bf16.mxu0 %v2311_v0 }
 0x1dd   : > { %1925 = vmatpush3.bf16.msra.mxu1 %v2102_v59 }
 0x1de   : > { %1926 = vmatprep.subr.bf16.mxu1 %v2311_v0 }
 0x1df   : > { %1943 = vmatpush3.bf16.msra.mxu0 %v2109_v15 }
 0x1e0   : > { %1944 = vmatprep.subr.bf16.mxu0 %v2311_v0 }
 0x1e1   : > { %1927 = vmatpush3.bf16.msra.mxu1 %v2103_v60 }
 0x1e2   : > { %1928 = vmatprep.subr.bf16.mxu1 %v2311_v0 }
 0x1e3   : > { %1945 = vmatpush3.bf16.msra.mxu0 %v2110_v16 }
 0x1e4   : > { %1946 = vmatprep.subr.bf16.mxu0 %v2311_v0 }
 0x1e5   : > { %1929 = vmatpush3.bf16.msra.mxu1 %v2104_v62 }
 0x1e6   : > { %1930 = vmatprep.subr.bf16.mxu1 %v2311_v0 }
 0x1e7   : > { %1947 = vmatpush3.bf16.msra.mxu0 %v2111_v17 }
 0x1e8   : > { %1948 = vmatprep.subr.bf16.mxu0 %v2311_v0 }
 0x1e9   : > { %1931 = vmatpush3.bf16.msra.mxu1 %v2105_v4  ;;  %v1668_v4 = vld [vmem:[%s2741_s6] ss:$0 sm:$0xff] }
 0x1ea   : > { %1932 = vmatprep.subr.bf16.mxu1 %v2311_v0 }
 0x1eb   : > { %1949 = vmatpush3.bf16.msra.mxu0 %v2112_v18 }
 0x1ec   : > { %1950 = vmatprep.subr.bf16.mxu0 %v2311_v0 }
 0x1ed   : > { %1933 = vmatpush3.bf16.msra.mxu1 %v2106_v9  ;;  %v1691_v9 = vunpack.c.h.bf16 %v1689_v3 }
 0x1ef   : > { %1951 = vmatpush3.bf16.msra.mxu0 %v2113_v19 }
 0x1f0   : > { %1935 = vmatmul.mubr.bf16.vlgmr.msra.gmra.mrb[12].mxu1 %v1235_v12  ;;  %1952 = vmatprep.subr.bf16.mxu0 %v2311_v0 }
 0x1f3   : > { %1953 = vmatpush3.bf16.msra.mxu0 %v2114_v20 }
 0x263   : > { %v597_v21 = vpop.f32.mrb[0].mxu1 }
 0x264   : > { %v1816_v22 = vpop.f32.mrb[1].mxu1 }
 0x265   : > { %v600_v23 = vpop.f32.mrb[2].mxu1 }
 0x266   : > { %v1817_v24 = vpop.f32.mrb[3].mxu1 }
 0x268   : > { %v705_v25 = vpop.f32.mrb[4].mxu0 }
 0x269   : > { %v706_v26 = vadd.f32 %v705_v25, %v597_v21  ;;  %v1836_v27 = vpop.f32.mrb[5].mxu0 }
 0x26a   : > { %v708_v28 = vpop.f32.mrb[6].mxu0 }
 0x26b   : > { %v709_v29 = vadd.f32 %v708_v28, %v600_v23  ;;  %v1837_v30 = vpop.f32.mrb[7].mxu0 }
 0x283   : > { %v831_v31 = vpop.f32.mrb[4].mxu1 }
 0x284   : > { %v838_v32 = vadd.f32 %v831_v31, %v706_v26  ;;  %v1856_v33 = vpop.f32.mrb[5].mxu1 }
 0x285   : > { %v834_v34 = vpop.f32.mrb[6].mxu1 }
 0x286   : > { %v839_v35 = vadd.f32 %v834_v34, %v709_v29  ;;  %v1857_v36 = vpop.f32.mrb[7].mxu1 }
 0x288   : > { %v947_v37 = vpop.f32.mrb[8].mxu0 }
 0x289   : > { %v954_v38 = vadd.f32 %v947_v37, %v838_v32  ;;  %v1876_v0 = vpop.f32.mrb[9].mxu0 }
 0x28a   : > { %v950_v39 = vpop.f32.mrb[10].mxu0 }
 0x28b   : > { %v955_v40 = vadd.f32 %v950_v39, %v839_v35  ;;  %v1877_v41 = vpop.f32.mrb[11].mxu0 }
 0x2a3   : > { %v1075_v42 = vpop.f32.mrb[8].mxu1 }
 0x2a4   : > { %v1082_v43 = vadd.f32 %v1075_v42, %v954_v38  ;;  %v1896_v44 = vpop.f32.mrb[9].mxu1 }
 0x2a5   : > { %v1078_v45 = vpop.f32.mrb[10].mxu1 }
 0x2a6   : > { %v1083_v46 = vadd.f32 %v1078_v45, %v955_v40  ;;  %v1897_v47 = vpop.f32.mrb[11].mxu1 }
 0x2a8   : > { %v1191_v48 = vpop.f32.mrb[12].mxu0 }
 0x2a9   : > { %v1198_v49 = vadd.f32 %v1191_v48, %v1082_v43  ;;  %v1916_v50 = vpop.f32.mrb[13].mxu0 }
 0x2aa   : > { %v1194_v51 = vpop.f32.mrb[14].mxu0 }
 0x2ab   : > { %v1199_v52 = vadd.f32 %v1194_v51, %v1083_v46  ;;  %v1917_v53 = vpop.f32.mrb[15].mxu0 }
 0x2c3   : > { %v1319_v54 = vpop.f32.mrb[12].mxu1 }
 0x2c4   : > { %v1326_v56 = vadd.f32 %v1319_v54, %v1198_v49  ;;  %v1936_v57 = vpop.f32.mrb[13].mxu1 }
 0x2c5   : > { %v1322_v58 = vpop.f32.mrb[14].mxu1 }
 0x2c6   : > { %v1335_v59 = vadd.f32 %v1667_v55, %v1326_v56  ;;  %v1327_v60 = vadd.f32 %v1322_v58, %v1199_v52  ;;  %v1937_v61 = vpop.f32.mrb[15].mxu1 }
 0x2c8   : > { %v1336_v62 = vadd.f32 %v1667_v55, %v1327_v60  ;;  %v1337_v63 = vmax.f32 %v1335_v59, 0.0 }
 0x2ca   : > { %v1338_v1 = vmax.f32 %v1336_v62, 0.0 }
 0x2cc   : > { %v1339_v2 = vpack.c.bf16 %v1338_v1, %v1337_v63 }
 0x2ce   : > { %1955 = vmatmul.mubr.bf16.vlgmr.msra.gmra.mrb[16].mxu0 %v1339_v2 }
 0x3a1   : > { %v1449_v6 = vpop.f32.mrb[16].mxu0 }
 0x3a2   : > { %v1450_v7 = vadd.f32 %v1668_v4, %v1449_v6  ;;  %v1956_v8 = vpop.f32.mrb[17].mxu0 }
 0x3a3   : > { %v1452_v10 = vpop.f32.mrb[18].mxu0 }
 0x3a4   : > { %v1456_v11 = vadd.f32 %v1690_v5, %v1450_v7  ;;  %v1453_v12 = vadd.f32 %v1668_v4, %v1452_v10  ;;  %v1957_v13 = vpop.f32.mrb[19].mxu0 }
 0x3a6   : > { %v1457_v14 = vadd.f32 %v1691_v9, %v1453_v12  ;;  %v1458_v15 = vmax.f32 %v1456_v11, 0.0 }
 0x3a8   : > { %v1459_v16 = vmax.f32 %v1457_v14, 0.0 }
 0x3aa   : > { %v1695_v17 = vpack.c.bf16 %v1459_v16, %v1458_v15 }
 0x3ac   : > { %1696 = vst [vmem:[%s340_s20] sm:$0xff] %v1695_v17  }
 0x3ad   : > { %2242 = shalt.err (!%p2239_p4)
}
 0x3ae   : > { %s2243_s13 = scalar_lea.hbm %s2689_s11, 128  ;;  %s2247_s14 = scalar_lea.hbm %s2742_s7, 256 }
 0x3af   : > { %p2244_p9 = scmp.ne.s32.totalorder %s2689_s11, %s2243_s13  ;;  %p2248_p8 = scmp.lt.u32.totalorder %s2689_s11, %s2742_s7 }
 0x3b0   : > { %p2249_p13 = scmp.lt.u32.totalorder %s2247_s14, %s2243_s13  ;;  %p2251_p10 = scmp.lt.u32.totalorder %s2243_s13, %s2689_s11 }
 0x3b1   : > { %p2245_p0 = pnand %p2244_p9, %p2511_p5 }
 0x3b2   : > { %p2250_p6 = por %p2249_p13, %p2248_p8 }
 0x3b3   : > { %p2246_p11 = pneg %p2245_p0 }
 0x3b4   : > { %p2252_p3 = por %p2251_p10, %p2250_p6 }
 0x3b6   : > { %p2253_p7 = pnand %p2252_p3, %p2246_p11 }
 0x3b8   : > { %2256 = shalt.err (!%p2253_p7)
}
 0x3b9   : > { %s2315_s16 = smov 64   ;;  %s2316_s29 = smov 4  }
 0x3ba   : > { %1972 = dma.vmem_to_hbm [thread:$0]  (%p2511_p5), %s2691_s21, 128, %s2689_s11, %s1471_s8, %s2315_s16, %s2315_s16, %s2316_s29  }
 0x3bb PF: > { %s2762_s30 = sld [smem:[#allocation16_spill]]  ;;  %s1499_s28 = sand.u32 1, %s2291_s24  }
 0x3bc   : > { %p2764_p1 = scmp.ge.s32.totalorder %s2303_s27, 2  ;;  %s1500_s23 = scalar_lea.sflag [#allocation5], %s1499_s28 }
 0x3c1   : > { %p2763_p12 = scmp.ne.s32.totalorder %s2762_s30, 0 }
 0x3c3   : > { %p1989_p2 = pnand %p2764_p1, %p2763_p12 }
 0x3c5   : > { %2286 = dma.done.wait (!%p1989_p2), %s1500_s23, 128  }
 0x3c6   : > { %2288 = vsyncadd (!%p1989_p2), %s1500_s23, 4294967168  ;;  %p22_p4 = scmp.ge.s32.totalorder %s2497_s22, 4   ;;  %s2765_s24 = smov %s2295_s25 }
 0x3c7   : > { %s2766_s25 = smov %s2299_s26  ;;  %s2767_s26 = smov %s2507_s18 }
 0x3c8   : > { %s2768_s27 = smov %s2497_s22  ;;  %24 = sbr.rel (!%p22_p4) target bundleno = 7 (0x7), region = 111 }
 0x3cf   :  { %1505 = vsyncpa [#allocation4], 1 }
 0x3d0   :  { %1507 = vsyncpa [#allocation4 + $0x1], 1 }
 0x3d1   :  { %1508 = vsyncpa [#allocation7], 1 }
 0x3d2   :  { %1509 = vsyncpa [#allocation10], 1 }
 0x3d3   :  { %1510 = vsyncpa [#allocation5], 1 }
 0x3d4   :  { %1512 = vsyncpa [#allocation5 + $0x1], 1 }

</bundles_post_ra>
